<compile_context>
chip_gen: v7x
topology: tpu7x:2x2x1
jax: 0.10.0
libtpu: 0.0.40
codegen_flags: <defaults>
</compile_context>

<pallas_src>
import functools

import jax
import jax.numpy as jnp
from jax.experimental import pallas as pl
from jax.experimental.pallas import tpu as pltpu


def _pick_tile(n, target):
    """Largest tile <= target that divides n and is a multiple of 8, else n (full dim ok)."""
    if n <= target:
        return n
    for t in range(target, 7, -1):
        if n % t == 0 and t % 8 == 0:
            return t
    return n  # full extent is always a legal block size


def _round_up(x, m):
    return ((x + m - 1) // m) * m


def _vmem_limit_bytes():
    """Generation-aware VMEM budget: ~80% of physical, capped at 100 MiB.

    v7x (64 MiB physical)  -> ~51 MiB (headroom for compiler-internal scratch).
    v5e/v6e (128 MiB)      -> 100 MiB (lets tiles grow past the 32 MiB scoped default).
    """
    cap = 64 * 1024 * 1024
    try:
        cap = int(pltpu.get_tpu_info().vmem_capacity_bytes)
    except Exception:
        pass
    return max(32 * 1024 * 1024, min(int(cap * 0.8), 100 * 1024 * 1024))


# ---------------------------------------------------------------------------
# Tiled linear projection kernel: y = x @ w + b (bf16 MXU operands, f32 accumulate)
# ---------------------------------------------------------------------------
def _linear_kernel(x_ref, w_ref, b_ref, o_ref):
    y = jnp.dot(x_ref[...].astype(jnp.bfloat16), w_ref[...].astype(jnp.bfloat16),
                preferred_element_type=jnp.float32)
    o_ref[...] = (y + b_ref[...].astype(jnp.float32)).astype(o_ref.dtype)


def linear(x, w, b, *, out_dtype=None, tm_target=256):
    """x: (..., K), w: (K, O), b: (O,). Returns (..., O) in out_dtype. Tiled over rows."""
    lead = x.shape[:-1]
    K = x.shape[-1]
    O = w.shape[-1]
    out_dtype = x.dtype if out_dtype is None else out_dtype
    x2 = x.reshape(-1, K)
    M = x2.shape[0]
    pad = (-M) % 8                      # keep the row tile a multiple of 8
    if pad:
        x2 = jnp.pad(x2, ((0, pad), (0, 0)))
    Mp = x2.shape[0]
    tm = _pick_tile(Mp, tm_target)
    # TODO(synk): add a K-reduction grid axis (f32 VMEM accumulator) if K > ~1024.
    bytes_accessed = (jnp.dtype(x2.dtype).itemsize * Mp * K
                      + jnp.dtype(w.dtype).itemsize * K * O
                      + jnp.dtype(out_dtype).itemsize * Mp * O
                      + jnp.dtype(b.dtype).itemsize * O)
    out = pl.pallas_call(
        _linear_kernel,
        out_shape=jax.ShapeDtypeStruct((Mp, O), out_dtype),
        grid_spec=pltpu.PrefetchScalarGridSpec(
            num_scalar_prefetch=0,
            grid=(Mp // tm,),
            in_specs=[
                pl.BlockSpec((tm, K), lambda i: (i, 0)),
                pl.BlockSpec((K, O), lambda i: (0, 0)),
                pl.BlockSpec((1, O), lambda i: (0, 0)),
            ],
            out_specs=pl.BlockSpec((tm, O), lambda i: (i, 0)),
        ),
        compiler_params=pltpu.CompilerParams(
            dimension_semantics=("parallel",),
            vmem_limit_bytes=_vmem_limit_bytes(),
        ),
        cost_estimate=pl.CostEstimate(
            flops=2 * Mp * K * O, transcendentals=0, bytes_accessed=int(bytes_accessed)),
    )(x2, w, b.reshape(1, O))
    if pad:
        out = out[:M]
    return out.reshape(*lead, O)


# ---------------------------------------------------------------------------
# Edge-augmented attention core with fused edge projection and fused output projection.
#   e_h[i,j,:] = edges[i,j,:] @ We_h + be_h                      (never materialized)
#   sim_h[i,j] = scale * ( q_h[i]·k_h[j] + edges[i,j]·(q_h[i] @ We_h^T) + q_h[i]·be_h )
#   attn_h     = softmax_j(sim_h)                                 (online, over key tiles)
#   out_h[i,:] = attn_h @ v_h + (attn_h[i] @ edges[i]) @ We_h + be_h
#   y[i,:]     = concat_h(out_h[i,:]) @ Wo + bo                   (fused epilogue)
# ---------------------------------------------------------------------------
def _attn_kernel(q_ref, k_ref, v_ref, e_ref, we_ref, be_ref, wo_ref, bo_ref, o_ref,
                 m_sc, l_sc, acc_sc, *, heads, dim_head, scale):
    jt = pl.program_id(2)
    nj = pl.num_programs(2)

    @pl.when(jt == 0)
    def _():
        m_sc[...] = jnp.full_like(m_sc, -jnp.inf)
        l_sc[...] = jnp.zeros_like(l_sc)
        acc_sc[...] = jnp.zeros_like(acc_sc)

    q = q_ref[0]                              # (ti, inner)  bf16 lane-dense slab (all heads)
    k = k_ref[0]                              # (tk, inner)  bf16
    v = v_ref[0]                              # (tk, inner)  bf16
    eblk = e_ref[0]                           # (ti, tk, E)  raw edges tile, bf16, read once
    we = we_ref[...]                          # (E, inner)   bf16
    be = be_ref[...].astype(jnp.float32)      # (1, inner)   f32

    # Heads are few and static; Python unroll keeps per-head temporaries short-lived.
    # TODO(synk): switch to lax.fori_loop(unroll=True) + pl.ds slicing if bundle dumps
    # show vreg spills for heads >= 8.
    for h in range(heads):
        sl = slice(h * dim_head, (h + 1) * dim_head)
        hh = slice(h, h + 1)
        qh, kh, vh = q[:, sl], k[:, sl], v[:, sl]       # bf16 (ti,Dh)/(tk,Dh)/(tk,Dh)
        weh = we[:, sl]                                 # bf16 (E, Dh)
        beh = be[:, sl]                                 # f32  (1, Dh)

        # ---- scores: node terms on the MXU; the edge term is a VPU/XLU multiply-reduce
        #      (no batched M=1 dot_generals, no (ti,tk,Dh) temporaries) ----------------
        s_nk = jax.lax.dot_general(qh, kh, (((1,), (1,)), ((), ())),
                                   preferred_element_type=jnp.float32)       # (ti, tk)
        # p[i,e] = q_h[i,:] @ We_h[e,:]^T ; recomputed per key tile — free MXU filler
        # under the HBM roof (the edge stream dominates).
        p = jax.lax.dot_general(qh, weh, (((1,), (1,)), ((), ())),
                                preferred_element_type=jnp.float32)          # (ti, E)
        s_e = jnp.sum(eblk * p[:, None, :], axis=-1)                         # (ti, tk) f32
        qb = jnp.sum(qh * beh, axis=-1, keepdims=True)                       # (ti, 1)  f32
        s = (s_nk + s_e + qb) * scale

        # ---- online softmax over this key tile: per-head (ti, 1) running state -------
        m_prev = m_sc[:, hh]                                                 # (ti, 1)
        m_new = jnp.maximum(m_prev, jnp.max(s, axis=-1, keepdims=True))
        alpha = jnp.exp(m_prev - m_new)                                      # (ti, 1)
        pexp = jnp.exp(s - m_new)                                            # (ti, tk)
        l_sc[:, hh] = alpha * l_sc[:, hh] + jnp.sum(pexp, axis=-1, keepdims=True)
        m_sc[:, hh] = m_new

        # ---- values: pexp @ v on the MXU; (pexp . edges) via VPU reduce, then @ We ----
        o_nk = jnp.dot(pexp.astype(vh.dtype), vh,
                       preferred_element_type=jnp.float32)                   # (ti, Dh)
        ae = jnp.sum(pexp[:, :, None] * eblk, axis=1)                        # (ti, E) f32
        o_e = jnp.dot(ae.astype(weh.dtype), weh,
                      preferred_element_type=jnp.float32)                    # (ti, Dh)
        acc_sc[:, sl] = alpha * acc_sc[:, sl] + o_nk + o_e

    @pl.when(jt == nj - 1)
    def _():
        # Normalize per head with an exact reciprocal (approx=True costs ~1e-3 rel. err).
        for h in range(heads):
            sl = slice(h * dim_head, (h + 1) * dim_head)
            inv_l = pl.reciprocal(l_sc[:, h:h + 1], approx=False)            # (ti, 1)
            acc_sc[:, sl] = acc_sc[:, sl] * inv_l
        # sum_j attn[i,j] * be == be (attention rows sum to 1): add the edge bias once.
        out_inner = acc_sc[...] + be                                         # (ti, inner)
        # Fused output projection (to_out): saves an HBM round trip of (B, N, inner).
        y = jnp.dot(out_inner.astype(wo_ref.dtype), wo_ref[...],
                    preferred_element_type=jnp.float32)                      # (ti, dim)
        o_ref[0] = (y + bo_ref[...].astype(jnp.float32)).astype(o_ref.dtype)


def attention_core(q, k, v, edges, we, be, wo, bo, *, heads, dim_head, scale,
                   out_dtype=None, ti_target=256, tk_target=128):
    """q,k,v: (B,N,inner) lane-dense (bf16); edges: (B,N,N,E) raw. Returns (B,N,dim)."""
    B, N, inner = q.shape
    E = edges.shape[-1]
    dim = wo.shape[-1]
    out_dtype = q.dtype if out_dtype is None else out_dtype
    ebytes = jnp.dtype(edges.dtype).itemsize
    qbytes = jnp.dtype(q.dtype).itemsize
    obytes = jnp.dtype(out_dtype).itemsize
    vmem_budget = _vmem_limit_bytes()

    # Per-grid-step VMEM estimate (includes lane padding of small E and the f32 VPU temps)
    # used to keep the double-buffered edge pipeline alive inside the budget (v7x: 64 MiB).
    def vmem_est(ti, tk):
        e_lane = _round_up(E, 128)
        tk_pad = _round_up(tk, 8)
        ti_pad = _round_up(ti, 8)
        inner_lane = _round_up(inner, 128)
        edges_buf = 2 * ti * tk_pad * e_lane * ebytes                 # double-buffered tile
        qkv_buf = 2 * (ti_pad + 2 * tk_pad) * inner_lane * qbytes
        out_buf = 2 * ti_pad * _round_up(dim, 128) * obytes
        scratch = ti_pad * inner_lane * 4 + 2 * ti_pad * 128 * 4
        temps = 2 * ti * tk_pad * e_lane * 4                          # f32 (ti,tk,E) temps
        weights = (_round_up(E, 8) + _round_up(inner, 8) + 16) * inner_lane * 4
        return edges_buf + qkv_buf + out_buf + scratch + temps + weights

    ti = _pick_tile(N, ti_target)
    tk = _pick_tile(N, tk_target)
    for _ in range(8):
        if vmem_est(ti, tk) <= int(vmem_budget * 0.7) or (ti <= 8 and tk <= 8):
            break
        if tk >= ti and tk > 8:
            tk = _pick_tile(N, max(tk // 2, 8))
        elif ti > 8:
            ti = _pick_tile(N, max(ti // 2, 8))
        else:
            break
    # v7x has 2 TensorCores: make sure the "parallel" (B, i) grid has >= 2 steps.
    if B * (N // ti) < 2:
        ti2 = _pick_tile(N, max(8, ti // 2))
        if N // ti2 >= 2:
            ti = ti2
    assert N % ti == 0 and N % tk == 0, (N, ti, tk)
    ni, nj = N // ti, N // tk

    kernel = functools.partial(_attn_kernel, heads=heads, dim_head=dim_head, scale=scale)

    flops = (B * heads * (4 * N * N * (dim_head + E) + 2 * N * E * dim_head * (nj + 1))
             + B * 2 * N * inner * dim)
    bytes_accessed = (B * N * N * E * ebytes                      # raw edges, read once
                      + B * N * inner * qbytes * (1 + 2 * ni)     # q once; k,v per i tile
                      + B * N * dim * obytes
                      + 4 * (E + inner + 2) * max(inner, dim))

    return pl.pallas_call(
        kernel,
        out_shape=jax.ShapeDtypeStruct((B, N, dim), out_dtype),
        grid_spec=pltpu.PrefetchScalarGridSpec(
            num_scalar_prefetch=0,
            grid=(B, ni, nj),
            in_specs=[
                pl.BlockSpec((1, ti, inner), lambda b, i, j: (b, i, 0)),     # q (query tile)
                pl.BlockSpec((1, tk, inner), lambda b, i, j: (b, j, 0)),     # k (key tile)
                pl.BlockSpec((1, tk, inner), lambda b, i, j: (b, j, 0)),     # v (key tile)
                pl.BlockSpec((1, ti, tk, E), lambda b, i, j: (b, i, j, 0)),  # raw edges tile
                pl.BlockSpec((E, inner), lambda b, i, j: (0, 0)),            # edge proj weight
                pl.BlockSpec((1, inner), lambda b, i, j: (0, 0)),            # edge proj bias
                pl.BlockSpec((inner, dim), lambda b, i, j: (0, 0)),          # out proj weight
                pl.BlockSpec((1, dim), lambda b, i, j: (0, 0)),              # out proj bias
            ],
            out_specs=pl.BlockSpec((1, ti, dim), lambda b, i, j: (b, i, 0)),
            scratch_shapes=[
                pltpu.VMEM((ti, heads), jnp.float32),   # running max, one lane per head
                pltpu.VMEM((ti, heads), jnp.float32),   # running denom, one lane per head
                pltpu.VMEM((ti, inner), jnp.float32),   # running output accumulator
            ],
        ),
        compiler_params=pltpu.CompilerParams(
            dimension_semantics=("parallel", "parallel", "arbitrary"),
            vmem_limit_bytes=vmem_budget,
        ),
        cost_estimate=pl.CostEstimate(
            flops=int(flops),
            transcendentals=int(B * heads * N * N),
            bytes_accessed=int(bytes_accessed),
        ),
    )(q, k, v, edges, we, be.reshape(1, inner), wo, bo.reshape(1, dim))


# ---------------------------------------------------------------------------
# Full Attention module forward
# ---------------------------------------------------------------------------
def init_attention_params(key, dim, dim_head, heads, edge_dim=None):
    edge_dim = dim if edge_dim is None else edge_dim
    inner = dim_head * heads
    ks = jax.random.split(key, 8)
    s = 0.02
    return {
        "wq": jax.random.normal(ks[0], (dim, inner), jnp.float32) * s,
        "bq": jax.random.normal(ks[1], (inner,), jnp.float32) * s,
        "wkv": jax.random.normal(ks[2], (dim, 2 * inner), jnp.float32) * s,
        "bkv": jax.random.normal(ks[3], (2 * inner,), jnp.float32) * s,
        "we": jax.random.normal(ks[4], (edge_dim, inner), jnp.float32) * s,
        "be": jax.random.normal(ks[5], (inner,), jnp.float32) * s,
        "wo": jax.random.normal(ks[6], (inner, dim), jnp.float32) * s,
        "bo": jax.random.normal(ks[7], (dim,), jnp.float32) * s,
    }


def attention_forward(params, nodes, edges, heads, dim_head):
    inner = heads * dim_head
    scale = float(dim_head) ** -0.5

    # Fused q / kv projection: one pass over `nodes`; bf16 outputs halve q/k/v HBM traffic.
    w_qkv = jnp.concatenate([params["wq"], params["wkv"]], axis=-1)   # (dim, 3*inner)
    b_qkv = jnp.concatenate([params["bq"], params["bkv"]], axis=-1)   # (3*inner,)
    qkv = linear(nodes, w_qkv, b_qkv, out_dtype=jnp.bfloat16)         # (B, N, 3*inner)
    q = qkv[..., :inner]
    k = qkv[..., inner:2 * inner]
    v = qkv[..., 2 * inner:]

    # Edge projection, softmax, value mix and output projection fused into one kernel
    # (raw edges in — ideally already bf16 — final (B, N, dim) out).
    return attention_core(
        q, k, v, edges,
        params["we"].astype(jnp.bfloat16), params["be"].astype(jnp.float32),
        params["wo"].astype(jnp.bfloat16), params["bo"].astype(jnp.float32),
        heads=heads, dim_head=dim_head, scale=scale, out_dtype=nodes.dtype)


# ---------------------------------------------------------------------------
# Pure-JAX f32 reference (matches the PyTorch module semantics)
# ---------------------------------------------------------------------------
def _split_heads(t, heads):
    B, N, HD = t.shape
    Dh = HD // heads
    return t.reshape(B, N, heads, Dh).transpose(0, 2, 1, 3).reshape(B * heads, N, Dh)


def _split_heads_edges(t, heads):
    B, I, J, HD = t.shape
    Dh = HD // heads
    return t.reshape(B, I, J, heads, Dh).transpose(0, 3, 1, 2, 4).reshape(B * heads, I, J, Dh)


def attention_reference(params, nodes, edges, heads, dim_head):
    nodes = nodes.astype(jnp.float32)
    edges = edges.astype(jnp.float32)
    B, N, _ = nodes.shape
    scale = float(dim_head) ** -0.5
    inner = heads * dim_head
    q = nodes @ params["wq"] + params["bq"]
    kv = nodes @ params["wkv"] + params["bkv"]
    k, v = kv[..., :inner], kv[..., inner:]
    e = edges @ params["we"] + params["be"]
    qh = _split_heads(q, heads)
    kh = _split_heads(k, heads)
    vh = _split_heads(v, heads)
    eh = _split_heads_edges(e, heads)
    kf = kh[:, None, :, :] + eh
    vf = vh[:, None, :, :] + eh
    sim = jnp.einsum("bid,bijd->bij", qh, kf) * scale
    attn = jax.nn.softmax(sim, axis=-1)
    out = jnp.einsum("bij,bijd->bid", attn, vf)
    out = out.reshape(B, heads, N, dim_head).transpose(0, 2, 1, 3).reshape(B, N, inner)
    return out @ params["wo"] + params["bo"]


if __name__ == "__main__":
    B, N, DIM = 2, 8, 32
    HEADS, DIM_HEAD = 4, 16
    EDGE_DIM = DIM

    key = jax.random.PRNGKey(0)
    k_nodes, k_edges, k_params = jax.random.split(key, 3)
    nodes = jax.random.normal(k_nodes, (B, N, DIM), jnp.float32)
    # Edges dominate HBM traffic (B*N^2*E): feed the kernel bf16 edges.
    edges = jax.random.normal(k_edges, (B, N, N, EDGE_DIM), jnp.float32).astype(jnp.bfloat16)
    params = init_attention_params(k_params, DIM, DIM_HEAD, HEADS, EDGE_DIM)

    out = attention_forward(params, nodes, edges, HEADS, DIM_HEAD)
    out = jax.block_until_ready(out)

    ref = attention_reference(params, nodes, edges, HEADS, DIM_HEAD)
    assert out.shape == (B, N, DIM), out.shape
    max_err = float(jnp.max(jnp.abs(out - ref)))
    # bf16 q/k/v/edges and bf16 MXU operands vs. an all-f32 reference -> bf16-level tolerance.
    assert jnp.allclose(out, ref, atol=2e-2, rtol=2e-2), max_err

    print("KERNEL_OK")
</pallas_src>

<mosaic_0001>
module attributes {stable_mosaic.version = 11 : i64} {
  func.func @_linear_kernel(%arg0: i32, %arg1: memref<16x32xf32, #tpu.memory_space<vmem>>, %arg2: memref<32x192xf32, #tpu.memory_space<vmem>>, %arg3: memref<1x192xf32, #tpu.memory_space<vmem>>, %arg4: memref<16x192xbf16, #tpu.memory_space<vmem>>) attributes {dimension_semantics = [#tpu.dimension_semantics<parallel>], iteration_bounds = array<i64: 1>, scalar_prefetch = 0 : i64, scratch_operands = 0 : i64, tpu.core_type = #tpu.core_type<tc>, window_params = [{transform_indices = @transform_0, window_bounds = array<i64: 16, 32>}, {pipeline_mode = #tpu.pipeline_mode<synchronous>, transform_indices = @transform_1, window_bounds = array<i64: 32, 192>}, {pipeline_mode = #tpu.pipeline_mode<synchronous>, transform_indices = @transform_2, window_bounds = array<i64: 1, 192>}, {transform_indices = @transform_3, window_bounds = array<i64: 16, 192>}]} {
    %c0 = arith.constant 0 : index
    %c0_0 = arith.constant 0 : index
    %0 = vector.load %arg1[%c0, %c0_0] : memref<16x32xf32, #tpu.memory_space<vmem>>, vector<16x32xf32>
    %1 = arith.truncf %0 : vector<16x32xf32> to vector<16x32xbf16>
    %c0_1 = arith.constant 0 : index
    %c0_2 = arith.constant 0 : index
    %2 = vector.load %arg2[%c0_1, %c0_2] : memref<32x192xf32, #tpu.memory_space<vmem>>, vector<32x192xf32>
    %3 = arith.truncf %2 : vector<32x192xf32> to vector<32x192xbf16>
    %cst = arith.constant dense<0.000000e+00> : vector<16x192xf32>
    %4 = tpu.matmul %1, %3, %cst {dimension_numbers = #tpu.dot_dimension_numbers<[1], [0], [0], [1], [0, 0, 1, 1], [], []>} : vector<16x32xbf16>, vector<32x192xbf16>, vector<16x192xf32> -> vector<16x192xf32>
    %c0_3 = arith.constant 0 : index
    %c0_4 = arith.constant 0 : index
    %5 = vector.load %arg3[%c0_3, %c0_4] : memref<1x192xf32, #tpu.memory_space<vmem>>, vector<1x192xf32>
    %6 = vector.broadcast %5 : vector<1x192xf32> to vector<16x192xf32>
    %7 = arith.addf %4, %6 : vector<16x192xf32>
    %8 = arith.truncf %7 : vector<16x192xf32> to vector<16x192xbf16>
    %c0_5 = arith.constant 0 : index
    %c0_6 = arith.constant 0 : index
    %9 = vector.load %arg4[%c0_5, %c0_6] : memref<16x192xbf16, #tpu.memory_space<vmem>>, vector<16x192xbf16>
    tpu.vector_store %arg4[%c0_5, %c0_6], %8 {strides = array<i32>} : memref<16x192xbf16, #tpu.memory_space<vmem>>, vector<16x192xbf16>,
    return
  }
  func.func @transform_0(%arg0: i32) -> (i32, i32) {
    %c0_i32 = arith.constant 0 : i32
    %c0_i32_0 = arith.constant 0 : i32
    return %arg0, %c0_i32 : i32, i32
  }
  func.func @transform_1(%arg0: i32) -> (i32, i32) {
    %c0_i32 = arith.constant 0 : i32
    %c0_i32_0 = arith.constant 0 : i32
    %c0_i32_1 = arith.constant 0 : i32
    return %c0_i32, %c0_i32_0 : i32, i32
  }
  func.func @transform_2(%arg0: i32) -> (i32, i32) {
    %c0_i32 = arith.constant 0 : i32
    %c0_i32_0 = arith.constant 0 : i32
    %c0_i32_1 = arith.constant 0 : i32
    return %c0_i32, %c0_i32_0 : i32, i32
  }
  func.func @transform_3(%arg0: i32) -> (i32, i32) {
    %c0_i32 = arith.constant 0 : i32
    %c0_i32_0 = arith.constant 0 : i32
    return %arg0, %c0_i32 : i32, i32
  }
}

</mosaic_0001>

<bundles_post_ra>
// kernel: tpu_custom_call.1
= control target key start
LH: loop header
LB: loop body
LE: loop exit
PB: predicated region body
PF: predicated region fallthrough
CT: control target
= control target key end

     0   :  { %8 = vsyncpa [#allocation3], 0  ;;  %s311_s0 = inlined_call_operand.hbm [shape: f32[16,32], index: 0, kind: input, shape index: {}]   ;;  %s312_s1 = inlined_call_operand.hbm [shape: f32[32,192], index: 1, kind: input, shape index: {}]   ;;  %s313_s2 = inlined_call_operand.vmem [shape: f32[1,192], index: 2, kind: input, shape index: {}]   ;;  %s314_s3 = inlined_call_operand.hbm [shape: bf16[16,192], index: 3, kind: output, shape index: {}]  }
   0x1   :  { %9 = vsyncpa [#allocation6], 0 }
   0x2   :  { %10 = vsyncpa [#allocation4], 0  ;;  %s238_s12 = smov [#allocation2]   ;;  %s166_s16 = scalar_lea.hbm %s311_s0, 256 }
   0x3   :  { %s16_s13 = sshll.u32 %s238_s12, 4  ;;  %p167_p0 = scmp.ne.s32.totalorder %s311_s0, %s166_s16  ;;  %s17_s13 = int_to_ptr.vmem [resolvable:$true] %s16_s13 }
   0x4   :  { %p170_p1 = scmp.lt.u32.totalorder %s166_s16, %s311_s0 }
   0x6   :  { %p172_p2 = pnand %p170_p1, %p167_p0 }
   0x8   :  { %175 = shalt.err (!%p172_p2)
}
   0x9   :  { %s176_s21 = scalar_lea.vmem %s17_s13, 256  ;;  %p181_p4 = scmp.lt.s32.totalorder %s17_s13, %s17_s13 }
   0xa   :  { %p177_p3 = scmp.ne.s32.totalorder %s17_s13, %s176_s21  ;;  %p182_p5 = scmp.lt.s32.totalorder %s176_s21, %s176_s21 }
   0xc   :  { %p183_p6 = por %p182_p5, %p181_p4 }
   0xe   :  { %p184_p7 = pnand %p183_p6, %p177_p3 }
  0x10   :  { %187 = shalt.err (!%p184_p7)
}
  0x11   :  { %s239_s22 = smov 128   ;;  %s240_s23 = smov 8  }
  0x12   :  { %22 = dma.hbm_to_vmem [thread:$0]  %s311_s0, 256, %s17_s13, [#allocation3], %s239_s22, %s239_s22, %s240_s23  }
  0x13   :  { %s241_s26 = smov [#allocation5]   ;;  %s188_s30 = scalar_lea.hbm %s312_s1, 1024 }
  0x14   :  { %s28_s27 = sshll.u32 %s241_s26, 4  ;;  %p189_p8 = scmp.ne.s32.totalorder %s312_s1, %s188_s30  ;;  %s29_s27 = int_to_ptr.vmem [resolvable:$true] %s28_s27 }
  0x15   :  { %p192_p9 = scmp.lt.u32.totalorder %s188_s30, %s312_s1 }
  0x17   :  { %p194_p10 = pnand %p192_p9, %p189_p8 }
  0x19   :  { %197 = shalt.err (!%p194_p10)
}
  0x1a   :  { %s198_s8 = scalar_lea.vmem %s29_s27, 1024  ;;  %p203_p12 = scmp.lt.s32.totalorder %s29_s27, %s29_s27 }
  0x1b   :  { %p199_p11 = scmp.ne.s32.totalorder %s29_s27, %s198_s8  ;;  %p204_p13 = scmp.lt.s32.totalorder %s198_s8, %s198_s8 }
  0x1d   :  { %p205_p0 = por %p204_p13, %p203_p12 }
  0x1f   :  { %p206_p1 = pnand %p205_p0, %p199_p11 }
  0x21   :  { %209 = shalt.err (!%p206_p1)
}
  0x22   :  { %s242_s0 = smov 256   ;;  %s243_s9 = smov 16  }
  0x23   :  { %34 = dma.hbm_to_vmem [thread:$0]  %s312_s1, 1024, %s29_s27, [#allocation6], %s242_s0, %s242_s0, %s243_s9  }
  0x24   :  { %232 = dma.done.wait [#allocation3], 256  }
  0x25   :  { %233 = vsyncadd [#allocation3], 4294967040 }
  0x26   :  { %234 = dma.done.wait [#allocation6], 1024  }
  0x27   :  { %235 = vsyncadd [#allocation6], 4294966272  ;;  %v244_v0 = vmov 0   ;;  %v48_v1 = vld [vmem:[#allocation5 + $0x8] sm:$0xff]  ;;  %v50_v2 = vld [vmem:[#allocation5 + $0x18] sm:$0xff]  ;;  %vm71_vm0 = vcmask 261120   ;;  %v61_v16 = vlaneseq }
  0x28   :  { %107 = vmatprep.mubr.bf16.mxu0 %v244_v0  ;;  %v47_v3 = vld [vmem:[#allocation5] sm:$0xff]  ;;  %v56_v4 = vpack.c.bf16 %v50_v2, %v48_v1  ;;  %v49_v5 = vld [vmem:[#allocation5 + $0x10] sm:$0xff]  ;;  %v52_v6 = vld [vmem:[#allocation5 + $0x28] sm:$0xff]  ;;  %vm130_vm1 = vcmask 1043456   ;;  %vm131_vm2 = vcmask 523268   ;;  %s245_s13 = smov [#allocation7]  }
  0x29   :  { %v54_v7 = vld [vmem:[#allocation5 + $0x38] sm:$0xff]  ;;  %v55_v8 = vpack.c.bf16 %v49_v5, %v47_v3  ;;  %v51_v10 = vld [vmem:[#allocation5 + $0x20] sm:$0xff]  ;;  %v53_v11 = vld [vmem:[#allocation5 + $0x30] sm:$0xff]  ;;  %v62_v17 = vshrl.u32 %v61_v16, 7  ;;  %s140_s14 = sshll.u32 %s245_s13, 4  ;;  %s141_s14 = int_to_ptr.vmem [resolvable:$true] %s140_s14 }
  0x2a   :  { %v58_v9 = vpack.c.bf16 %v54_v7, %v52_v6  ;;  %75 = vmatprep.subr.bf16.mxu0 %v56_v4  ;;  %v57_v12 = vpack.c.bf16 %v53_v11, %v51_v10  ;;  %v44_v13 = vld [vmem:[#allocation2] sm:$0xff]  ;;  %v45_v14 = vld [vmem:[#allocation2 + $0x8] sm:$0xff]  ;;  %vm132_vm3 = vmor %vm131_vm2, %vm130_vm1  ;;  %p215_p3 = scmp.lt.s32.totalorder %s141_s14, %s141_s14 }
  0x2b   :  { %76 = vmatpush1.bf16.msra.mxu0 %v55_v8  ;;  %v46_v15 = vpack.c.bf16 %v45_v14, %v44_v13  ;;  %v63_v18 = vsub.s32 0, %v62_v17  ;;  %v59_v19 = vld [vmem:[%s313_s2] sm:$0x3]  ;;  %v67_v20 = vsub.s32 1, %v62_v17  ;;  %s210_s2 = scalar_lea.vmem %s141_s14, 256 }
  0x2c   :  { %77 = vmatprep.subr.bf16.mxu0 %v58_v9  ;;  %p211_p2 = scmp.ne.s32.totalorder %s141_s14, %s210_s2  ;;  %p216_p4 = scmp.lt.s32.totalorder %s210_s2, %s210_s2 }
  0x2d   :  { %v64_v21 = vrot.slane %v59_v19, %v63_v18  ;;  %v68_v22 = vrot.slane %v59_v19, %v67_v20 }
  0x2e   :  { %p217_p5 = por %p216_p4, %p215_p3 }
  0x2f   :  { %78 = vmatpush1.bf16.msra.mxu0 %v57_v12 }
  0x30   :  { %p218_p6 = pnand %p217_p5, %p211_p2 }
  0x32   :  { %153 = vmatmul.mubr.msk.bf16.vlgmr.msra.gmra.mrb[0].mxu0 %vm71_vm0, %v46_v15 }
 0x105   :  { %v109_v23 = vpop.f32.mrb[0].mxu0 }
 0x106   :  { %v110_v24 = vadd.f32 %v109_v23, %v64_v21  ;;  %v111_v25 = vpop.f32.mrb[1].mxu0 }
 0x107   :  { %v112_v26 = vadd.f32 %v111_v25, %v68_v22  ;;  %v113_v27 = vpop.f32.mrb[2].mxu0 }
 0x108   :  { %v114_v28 = vadd.f32 %v113_v27, %v64_v21  ;;  %v115_v29 = vpop.f32.mrb[3].mxu0 }
 0x109   :  { %v156_v30 = vpack.c.bf16 %v112_v26, %v110_v24  ;;  %v116_v31 = vadd.f32 %v115_v29, %v68_v22 }
 0x10b   :  { %v157_v32 = vpack.c.bf16 %v116_v31, %v114_v28  ;;  %133 = vst.msk [vmem:[#allocation7] sm:$0xff] %vm132_vm3, %v156_v30 }
 0x10d   :  { %134 = vst.msk [vmem:[#allocation7 + $0x8] sm:$0xff] %vm132_vm3, %v157_v32 }
 0x10e   :  { %221 = shalt.err (!%p218_p6)
}
 0x10f   :  { %s222_s17 = scalar_lea.hbm %s314_s3, 256 }
 0x110   :  { %p223_p7 = scmp.ne.s32.totalorder %s314_s3, %s222_s17  ;;  %p226_p8 = scmp.lt.u32.totalorder %s222_s17, %s314_s3 }
 0x112   :  { %p228_p9 = pnand %p226_p8, %p223_p7 }
 0x114   :  { %231 = shalt.err (!%p228_p9)
}
 0x115   :  { %146 = dma.vmem_to_hbm [thread:$0]  %s141_s14, 256, %s314_s3, [#allocation4], %s239_s22, %s239_s22, %s240_s23  }
 0x116   :  { %236 = dma.done.wait [#allocation4], 256  }
 0x117   :  { %237 = vsyncadd [#allocation4], 4294967040 }
 0x118   :  { %150 = vsyncpa [#allocation3], 1 }
 0x119   :  { %151 = vsyncpa [#allocation6], 1 }
 0x11a   :  { %152 = vsyncpa [#allocation4], 1 }

</bundles_post_ra>
